<compile_context>
chip_gen: v7x
topology: tpu7x:2x2x1
jax: 0.10.0
libtpu: 0.0.40
codegen_flags: <defaults>
</compile_context>

<pallas_src>
import functools

import jax
import jax.numpy as jnp
from jax import lax
from jax.experimental import pallas as pl
from jax.experimental.pallas import tpu as pltpu

LANE_W = 512    # lane-dense last dim (multiple of 128)
SUBLANES = 8    # f32 sublanes per vreg (accumulation is always f32)


def _single_block_kernel(x_ref, t_ref, out_ref, *, c_mse, c_l1):
    """Whole problem in one VMEM block: fused weighted error, single reduce."""
    d = x_ref[...].astype(jnp.float32) - t_ref[...].astype(jnp.float32)
    w = jnp.float32(c_mse) * (d * d) + jnp.float32(c_l1) * jnp.abs(d)
    out_ref[0, 0] = jnp.sum(w)


def _tiled_kernel(x_ref, t_ref, out_ref, acc_ref, *,
                  c_mse, c_l1, rows_total, tile_r, bpc, need_mask):
    """Streaming path: fused weighted error folded into an (8, LANE_W) accumulator.

    Grid is (2, blocks_per_core): axis 0 = core split ("parallel"),
    axis 1 = row blocks ("arbitrary", accumulator carried across it).
    """
    i = pl.program_id(1)

    @pl.when(i == 0)
    def _init():
        acc_ref[...] = jnp.zeros_like(acc_ref)

    d = x_ref[...].astype(jnp.float32) - t_ref[...].astype(jnp.float32)
    w = jnp.float32(c_mse) * (d * d) + jnp.float32(c_l1) * jnp.abs(d)

    if need_mask:
        # Mask rows beyond the true row count: covers both the partial last
        # block (Pallas does NOT zero out-of-bounds block regions) and the
        # clamped duplicate block a core gets when nblocks is odd.
        start_row = (pl.program_id(0) * bpc + i) * tile_r
        rid = lax.broadcasted_iota(jnp.int32, w.shape, 0) + start_row
        w = jnp.where(rid < rows_total, w, 0.0)

    # Sublane-aligned fold (tile_r is a multiple of 8): pure VALU adds into a
    # 16 KiB accumulator -- no XLU, no large accumulator RMW traffic.
    acc_ref[...] += jnp.sum(w.reshape(tile_r // SUBLANES, SUBLANES, LANE_W), axis=0)

    @pl.when(i == pl.num_programs(1) - 1)
    def _finalize():
        out_ref[0, 0] = jnp.sum(acc_ref[...])


def _default_max_tile_bytes():
    """Per-input tile budget: fits each generation's scoped-VMEM default with
    2 inputs x 2 pipeline buffers."""
    try:
        kind = jax.devices()[0].device_kind.lower()
    except Exception:
        kind = ""
    if "v6" in kind or "v7" in kind:
        return 4 << 20   # 16 MiB double-buffered < 32 MiB scoped default
    return 2 << 20       # v5e / unknown: 8 MiB double-buffered < 16 MiB default


def multi_criterion_loss(x, t, weights=(2.0, 1.0), max_tile_bytes=None):
    """Pallas implementation of MultiCriterion([MSELoss, L1Loss], weights).forward."""
    assert x.shape == t.shape
    # Normalize the weights exactly as MultiCriterion.__init__ does.
    wsum = float(sum(weights))
    w_mse, w_l1 = (float(w) / wsum for w in weights)

    n_elems = 1
    for s in x.shape:
        n_elems *= int(s)
    # Fold normalized weights and 1/N into compile-time constants.
    c_mse = w_mse / float(n_elems)
    c_l1 = w_l1 / float(n_elems)

    if max_tile_bytes is None:
        max_tile_bytes = _default_max_tile_bytes()
    itemsize = jnp.dtype(x.dtype).itemsize
    # dtype-aware sublane rounding: 8 rows f32, 16 bf16, 32 int8/fp8.
    row_align = max(SUBLANES, (SUBLANES * 4) // itemsize)
    tile_r = max(row_align,
                 (max_tile_bytes // (LANE_W * itemsize)) // row_align * row_align)

    # Flatten (free reshape for contiguous arrays).  Pad only if the element
    # count is not a multiple of LANE_W (zeros contribute 0 to both sums).
    xf = x.reshape(-1)
    tf = t.reshape(-1)
    rows = -(-n_elems // LANE_W)
    padded = rows * LANE_W
    if padded != n_elems:
        # TODO(synk): replace with pl.ANY + manual flat-chunk DMA to avoid this
        # copy for very large, non-multiple-of-LANE_W inputs.
        xf = jnp.pad(xf, (0, padded - n_elems))
        tf = jnp.pad(tf, (0, padded - n_elems))
    x2 = xf.reshape(rows, LANE_W)
    t2 = tf.reshape(rows, LANE_W)

    if rows <= tile_r:
        # Small input: one block (block_shape == full array dims, so any row
        # count is legal), no scratch, no masking, no per-step overhead.
        kernel = functools.partial(_single_block_kernel, c_mse=c_mse, c_l1=c_l1)
        out = pl.pallas_call(
            kernel,
            out_shape=jax.ShapeDtypeStruct((1, 1), jnp.float32),
            grid_spec=pltpu.PrefetchScalarGridSpec(
                num_scalar_prefetch=0,
                grid=(1,),
                in_specs=[
                    pl.BlockSpec((rows, LANE_W), lambda i: (0, 0)),
                    pl.BlockSpec((rows, LANE_W), lambda i: (0, 0)),
                ],
                out_specs=pl.BlockSpec(memory_space=pltpu.SMEM),
            ),
            compiler_params=pltpu.CompilerParams(
                dimension_semantics=("arbitrary",)),
        )(x2, t2)
        return out[0, 0]

    # Large input: streaming tiles, no row padding, 2-way core split (v7x).
    nblocks = -(-rows // tile_r)
    bpc = -(-nblocks // 2)                       # row-blocks per core
    need_mask = (rows % tile_r != 0) or (2 * bpc != nblocks)

    def in_map(c, i):
        # Clamp so a core's surplus block (odd nblocks) still maps in-bounds;
        # its contribution is masked to zero inside the kernel.
        return (jnp.minimum(c * bpc + i, nblocks - 1), 0)

    kernel = functools.partial(
        _tiled_kernel, c_mse=c_mse, c_l1=c_l1, rows_total=rows,
        tile_r=tile_r, bpc=bpc, need_mask=need_mask)

    out = pl.pallas_call(
        kernel,
        out_shape=jax.ShapeDtypeStruct((2, 1), jnp.float32),
        grid_spec=pltpu.PrefetchScalarGridSpec(
            num_scalar_prefetch=0,
            grid=(2, bpc),
            in_specs=[
                pl.BlockSpec((tile_r, LANE_W), in_map),
                pl.BlockSpec((tile_r, LANE_W), in_map),
            ],
            out_specs=pl.BlockSpec((1, 1), lambda c, i: (c, 0),
                                   memory_space=pltpu.SMEM),
            scratch_shapes=[
                pltpu.VMEM((SUBLANES, LANE_W), jnp.float32),  # fused accumulator
            ],
        ),
        compiler_params=pltpu.CompilerParams(
            # Row-reduction axis must stay serial (accumulator RMW); leading
            # axis is the per-TensorCore split (harmless on single-core chips).
            dimension_semantics=("parallel", "arbitrary")),
    )(x2, t2)
    return out[0, 0] + out[1, 0]


def multi_criterion_ref(x, t, weights=(2.0, 1.0)):
    wsum = float(sum(weights))
    w_mse, w_l1 = (float(w) / wsum for w in weights)
    xf = x.astype(jnp.float32)
    tf = t.astype(jnp.float32)
    d = xf - tf
    return w_mse * jnp.mean(d * d) + w_l1 * jnp.mean(jnp.abs(d))


if __name__ == "__main__":
    keys = jax.random.split(jax.random.PRNGKey(0), 8)

    # 1) Demo NCHW input (single-block path), as the PyTorch criteria would see.
    x = jax.random.normal(keys[0], (2, 4, 16, 16), dtype=jnp.float32)
    t = jax.random.normal(keys[1], (2, 4, 16, 16), dtype=jnp.float32)
    loss = jax.block_until_ready(multi_criterion_loss(x, t))
    ref = multi_criterion_ref(x, t)
    assert jnp.allclose(loss, ref, rtol=1e-5, atol=1e-5), (loss, ref)

    # 2) Tiled path with an odd block count (exercises the clamped/masked
    #    surplus block of the 2-way core split).  Small tile override keeps
    #    shapes small while exercising the streaming machinery.
    x2 = jax.random.normal(keys[2], (2, 4, 32, 48), dtype=jnp.float32)   # 24 rows
    t2 = jax.random.normal(keys[3], (2, 4, 32, 48), dtype=jnp.float32)
    loss2 = jax.block_until_ready(
        multi_criterion_loss(x2, t2, max_tile_bytes=8 * LANE_W * 4))
    ref2 = multi_criterion_ref(x2, t2)
    assert jnp.allclose(loss2, ref2, rtol=1e-5, atol=1e-5), (loss2, ref2)

    # 3) Non-multiple-of-LANE_W size + partial last block (in-kernel masking).
    x3 = jax.random.normal(keys[4], (3, 5, 16, 29), dtype=jnp.float32)   # 6960 elems
    t3 = jax.random.normal(keys[5], (3, 5, 16, 29), dtype=jnp.float32)
    loss3 = jax.block_until_ready(
        multi_criterion_loss(x3, t3, max_tile_bytes=8 * LANE_W * 4))
    ref3 = multi_criterion_ref(x3, t3)
    assert jnp.allclose(loss3, ref3, rtol=1e-5, atol=1e-5), (loss3, ref3)

    # 4) bf16 input (dtype-aware 16-row tiles, unmasked tiled path).
    x4 = jax.random.normal(keys[6], (2, 8, 32, 64), dtype=jnp.bfloat16)  # 64 rows
    t4 = jax.random.normal(keys[7], (2, 8, 32, 64), dtype=jnp.bfloat16)
    loss4 = jax.block_until_ready(
        multi_criterion_loss(x4, t4, max_tile_bytes=16 * LANE_W * 2))
    ref4 = multi_criterion_ref(x4, t4)
    assert jnp.allclose(loss4, ref4, rtol=1e-5, atol=1e-5), (loss4, ref4)

    print("KERNEL_OK")
</pallas_src>

<mosaic_0001>
module attributes {stable_mosaic.version = 11 : i64} {
  func.func @_single_block_kernel(%arg0: i32, %arg1: memref<4x512xf32, #tpu.memory_space<vmem>>, %arg2: memref<4x512xf32, #tpu.memory_space<vmem>>, %arg3: memref<1x1xf32, #tpu.memory_space<smem>>) attributes {dimension_semantics = [#tpu.dimension_semantics<arbitrary>], iteration_bounds = array<i64: 1>, scalar_prefetch = 0 : i64, scratch_operands = 0 : i64, tpu.core_type = #tpu.core_type<tc>, window_params = [{pipeline_mode = #tpu.pipeline_mode<synchronous>, transform_indices = @transform_0, window_bounds = array<i64: 4, 512>}, {pipeline_mode = #tpu.pipeline_mode<synchronous>, transform_indices = @transform_1, window_bounds = array<i64: 4, 512>}, {transform_indices = @transform_2, window_bounds = array<i64: 1, 1>}]} {
    %c0 = arith.constant 0 : index
    %c0_0 = arith.constant 0 : index
    %0 = vector.load %arg1[%c0, %c0_0] : memref<4x512xf32, #tpu.memory_space<vmem>>, vector<4x512xf32>
    %c0_1 = arith.constant 0 : index
    %c0_2 = arith.constant 0 : index
    %1 = vector.load %arg2[%c0_1, %c0_2] : memref<4x512xf32, #tpu.memory_space<vmem>>, vector<4x512xf32>
    %2 = arith.subf %0, %1 : vector<4x512xf32>
    %3 = arith.mulf %2, %2 : vector<4x512xf32>
    %cst = arith.constant 3.25520843E-4 : f32
    %4 = vector.broadcast %cst : f32 to vector<4x512xf32>
    %5 = arith.mulf %4, %3 : vector<4x512xf32>
    %6 = math.absf %2 : vector<4x512xf32>
    %cst_3 = arith.constant 1.62760422E-4 : f32
    %7 = vector.broadcast %cst_3 : f32 to vector<4x512xf32>
    %8 = arith.mulf %7, %6 : vector<4x512xf32>
    %9 = arith.addf %5, %8 : vector<4x512xf32>
    %10 = vector.shape_cast %9 : vector<4x512xf32> to vector<1x4x512xf32>
    %cst_4 = arith.constant dense<0.000000e+00> : vector<1xf32>
    %11 = vector.multi_reduction <add>, %10, %cst_4 [1, 2] : vector<1x4x512xf32> to vector<1xf32>
    %12 = vector.shape_cast %11 : vector<1xf32> to vector<1x1x1xf32>
    %13 = vector.extract %12[0, 0, 0] : f32 from vector<1x1x1xf32>
    %c0_5 = arith.constant 0 : index
    %c0_6 = arith.constant 0 : index
    %14 = memref.load %arg3[%c0_5, %c0_6] : memref<1x1xf32, #tpu.memory_space<smem>>
    memref.store %13, %arg3[%c0_5, %c0_6] : memref<1x1xf32, #tpu.memory_space<smem>>
    return
  }
  func.func @transform_0(%arg0: i32) -> (i32, i32) {
    %c0_i32 = arith.constant 0 : i32
    %c0_i32_0 = arith.constant 0 : i32
    %c0_i32_1 = arith.constant 0 : i32
    return %c0_i32, %c0_i32_0 : i32, i32
  }
  func.func @transform_1(%arg0: i32) -> (i32, i32) {
    %c0_i32 = arith.constant 0 : i32
    %c0_i32_0 = arith.constant 0 : i32
    %c0_i32_1 = arith.constant 0 : i32
    return %c0_i32, %c0_i32_0 : i32, i32
  }
  func.func @transform_2(%arg0: i32) -> (i32, i32) {
    %c0_i32 = arith.constant 0 : i32
    %c0_i32_0 = arith.constant 0 : i32
    %c0_i32_1 = arith.constant 0 : i32
    return %c0_i32, %c0_i32_0 : i32, i32
  }
}

</mosaic_0001>

<bundles_post_ra>
// kernel: tpu_custom_call.1
= control target key start
LH: loop header
LB: loop body
LE: loop exit
PB: predicated region body
PF: predicated region fallthrough
CT: control target
= control target key end

     0   :  { %7 = vsyncpa [#allocation3], 0  ;;  %s211_s0 = inlined_call_operand.hbm [shape: f32[4,512], index: 0, kind: input, shape index: {}]   ;;  %s212_s1 = inlined_call_operand.hbm [shape: f32[4,512], index: 1, kind: input, shape index: {}]   ;;  %s213_s2 = inlined_call_operand.hbm [shape: f32[1,1], index: 2, kind: output, shape index: {}]  }
   0x1   :  { %8 = vsyncpa [#allocation6], 0 }
   0x2   :  { %9 = vsyncpa [#allocation4], 0  ;;  %s157_s9 = smov [#allocation2]   ;;  %s158_s11 = smov [#allocation5]  }
   0x3   :  { %s16_s10 = sshll.u32 %s157_s9, 4  ;;  %s26_s12 = sshll.u32 %s158_s11, 4  ;;  %s17_s10 = int_to_ptr.vmem [resolvable:$true] %s16_s10  ;;  %s27_s12 = int_to_ptr.vmem [resolvable:$true] %s26_s12 }
   0x4   :  { %s97_s15 = scalar_lea.hbm %s211_s0, 256 }
   0x5   :  { %p98_p0 = scmp.ne.s32.totalorder %s211_s0, %s97_s15  ;;  %p101_p1 = scmp.lt.u32.totalorder %s97_s15, %s211_s0 }
   0x7   :  { %p103_p2 = pnand %p101_p1, %p98_p0 }
   0x9   :  { %106 = shalt.err (!%p103_p2)
}
   0xa   :  { %s107_s20 = scalar_lea.vmem %s17_s10, 256  ;;  %p112_p4 = scmp.lt.s32.totalorder %s17_s10, %s17_s10 }
   0xb   :  { %p108_p3 = scmp.ne.s32.totalorder %s17_s10, %s107_s20  ;;  %p113_p5 = scmp.lt.s32.totalorder %s107_s20, %s107_s20 }
   0xd   :  { %p114_p6 = por %p113_p5, %p112_p4 }
   0xf   :  { %p115_p7 = pnand %p114_p6, %p108_p3 }
  0x11   :  { %118 = shalt.err (!%p115_p7)
}
  0x12   :  { %19 = dma.hbm_to_vmem [thread:$0]  %s211_s0, 256, %s17_s10, [#allocation3]  }
  0x13   :  { %s119_s25 = scalar_lea.hbm %s212_s1, 256 }
  0x14   :  { %p120_p8 = scmp.ne.s32.totalorder %s212_s1, %s119_s25  ;;  %p123_p9 = scmp.lt.u32.totalorder %s119_s25, %s212_s1 }
  0x16   :  { %p125_p10 = pnand %p123_p9, %p120_p8 }
  0x18   :  { %128 = shalt.err (!%p125_p10)
}
  0x19   :  { %s129_s30 = scalar_lea.vmem %s27_s12, 256  ;;  %p134_p12 = scmp.lt.s32.totalorder %s27_s12, %s27_s12 }
  0x1a   :  { %p130_p11 = scmp.ne.s32.totalorder %s27_s12, %s129_s30  ;;  %p135_p13 = scmp.lt.s32.totalorder %s129_s30, %s129_s30 }
  0x1c   :  { %p136_p0 = por %p135_p13, %p134_p12 }
  0x1e   :  { %p137_p1 = pnand %p136_p0, %p130_p11 }
  0x20   :  { %140 = shalt.err (!%p137_p1)
}
  0x21   :  { %29 = dma.hbm_to_vmem [thread:$0]  %s212_s1, 256, %s27_s12, [#allocation6]  }
  0x22   :  { %151 = dma.done.wait [#allocation3], 256  }
  0x23   :  { %152 = vsyncadd [#allocation3], 4294967040 }
  0x24   :  { %153 = dma.done.wait [#allocation6], 256  }
  0x25   :  { %154 = vsyncadd [#allocation6], 4294967040  ;;  %v36_v0 = vld [vmem:[#allocation2] sm:$0xff]  ;;  %v37_v1 = vld [vmem:[#allocation2 + $0x8] sm:$0xff]  ;;  %vm58_vm0 = vcmask 1043456   ;;  %s141_s6 = scalar_lea.hbm %s213_s2, 16 }
  0x26   :  { %v38_v2 = vld [vmem:[#allocation5] sm:$0xff]  ;;  %v39_v3 = vld [vmem:[#allocation5 + $0x8] sm:$0xff]  ;;  %p142_p2 = scmp.ne.s32.totalorder %s213_s2, %s141_s6  ;;  %p145_p3 = scmp.lt.u32.totalorder %s141_s6, %s213_s2 }
  0x27   :  { %v40_v4 = vsub.f32 %v36_v0, %v38_v2  ;;  %v41_v5 = vsub.f32 %v37_v1, %v39_v3 }
  0x28   :  { %p147_p4 = pnand %p145_p3, %p142_p2 }
  0x29   :  { %v42_v6 = vmul.f32 %v40_v4, %v40_v4  ;;  %v46_v7 = vand.u32 2147483647, %v40_v4  ;;  %v43_v8 = vmul.f32 %v41_v5, %v41_v5  ;;  %v47_v9 = vand.u32 2147483647, %v41_v5 }
  0x2b   :  { %v44_v10 = vmul.f32 0.00032552084, %v42_v6  ;;  %v48_v11 = vmul.f32 0.00016276042, %v46_v7  ;;  %v45_v12 = vmul.f32 0.00032552084, %v43_v8 }
  0x2c   :  { %v49_v13 = vmul.f32 0.00016276042, %v47_v9 }
  0x2d   :  { %v50_v14 = vadd.f32 %v48_v11, %v44_v10 }
  0x2e   :  { %v51_v15 = vadd.f32 %v49_v13, %v45_v12 }
  0x2f   :  { %v54_v16 = vcombine.high %v50_v14, %v50_v14  ;;  %v59_v17 = vsel %vm58_vm0, %v50_v14, 0.0 }
  0x30   :  { %v55_v18 = vcombine.high %v51_v15, %v51_v15  ;;  %v62_v20 = vsel %vm58_vm0, %v51_v15, 0.0 }
  0x31   :  { %v60_v19 = vsel %vm58_vm0, %v54_v16, 0.0 }
  0x32   :  { %v61_v21 = vadd.f32 %v60_v19, %v59_v17  ;;  %v64_v22 = vsel %vm58_vm0, %v55_v18, 0.0 }
  0x34   :  { %v63_v23 = vadd.f32 %v62_v20, %v61_v21 }
  0x36   :  { %v65_v24 = vadd.f32 %v64_v22, %v63_v23 }
  0x38   :  { %66 = vadd.xlane.f32.xlu0 %v65_v24 }
  0xc5   :  { %v67_v25 = vpop.xlane.xlu0 %66 }
  0xc6   :  { %v68_v26 = vrot.slane %v67_v25, 4 }
  0xc8   :  { %v69_v27 = vadd.f32 %v68_v26, %v67_v25 }
  0xca   :  { %v70_v28 = vrot.slane %v69_v27, 2 }
  0xcc   :  { %v71_v29 = vadd.f32 %v70_v28, %v69_v27 }
  0xce   :  { %v72_v30 = vrot.slane %v71_v29, 1 }
  0xd0   :  { %v73_v31 = vadd.f32 %v72_v30, %v71_v29 }
  0xd2   :  { %92 = vpush %v73_v31 }
 0x103   :  { %s93_s1 = spop %92 }
 0x104   :  { %76 = sst [smem:[#allocation7]] %s93_s1 }
 0x105   :  { %150 = shalt.err (!%p147_p4)
}
 0x106   :  { %s159_s11 = smov [#allocation7]  }
 0x107   :  { %84 = dma.smem_to_hbm %s159_s11, 16, %s213_s2, [#allocation4]  }
 0x108   :  { %155 = dma.done.wait [#allocation4], 16  }
 0x109   :  { %156 = vsyncadd [#allocation4], 4294967280 }
 0x10a   :  { %88 = sfence }
 0x10b   :  { %89 = vsyncpa [#allocation3], 1 }
 0x10c   :  { %90 = vsyncpa [#allocation6], 1 }
 0x10d   :  { %91 = vsyncpa [#allocation4], 1 }

</bundles_post_ra>
